<compile_context>
chip_gen: v7x
topology: tpu7x:2x2x1
jax: 0.10.0
libtpu: 0.0.40
codegen_flags: <defaults>
</compile_context>

<pallas_src>
from functools import partial

import jax
import jax.numpy as jnp
from jax.experimental import pallas as pl
from jax.experimental.pallas import tpu as pltpu


def _round_up(a, m):
    return (a + m - 1) // m * m


_VMEM_BUDGET = 28 * 1024 * 1024  # target per-step live set (shrink Nb above this)


def _step_vmem_bytes(Nb, C_in, C_out, K, L, F, pad):
    """Rough per-grid-step VMEM footprint (tile-padded), for Nb selection / limit."""
    T2 = Nb * F
    T1 = T2 + pad
    TF = T2 + 2 * pad
    r8 = lambda v: _round_up(max(int(v), 1), 8)
    rl = lambda v: _round_up(max(int(v), 1), 128)
    lo, hi = 2, 4  # bf16 / f32
    b = 0
    b += 2 * Nb * r8(C_in) * rl(L) * lo           # input block (double-buffered)
    b += r8(C_in) * rl(TF) * lo                   # merged frame scratch
    b += r8(K * C_in + 1) * rl(T1) * lo           # conv1 im2col taps
    b += r8(C_out) * rl(T1) * (hi + lo)           # raw1 (f32) + h1 (bf16)
    b += r8(K * C_out + 1) * rl(T2) * lo          # conv2 im2col taps
    b += 2 * r8(C_out) * rl(T2) * hi              # raw2 + h2 (f32)
    b += 2 * r8(C_out) * rl(K * max(C_in, C_out) + 1) * lo  # folded weights
    return b


def make_tcn_kernel(K, dil, C_in, C_out, L, F, Nb, dtype):
    pad = (K - 1) * dil
    L1 = L + pad
    L2 = L1 + pad
    T2 = Nb * F            # conv2-output / pooling frame width (all slabs)
    T1 = T2 + pad          # h1 frame width (conv2 taps need `pad` extra columns)
    inv_L2 = 1.0 / float(L2)
    gap_w = F - L          # zero gap between one slab's data and the next slab's data

    def kernel(x_ref, w1_ref, ind1_ref, w2_ref, o_ref, frame_ref):
        # ---- stage 0: build the merged channel-major frame in VMEM ----
        # slab n occupies columns [n*F, (n+1)*F); its sample data sits at
        # [n*F + 2*pad, n*F + 2*pad + L); every other column must be exactly zero.
        # Gaps are rewritten every step (no reliance on cross-step scratch state,
        # which would break under megacore grid splitting).
        if pad > 0:
            frame_ref[:, 0:2 * pad] = jnp.zeros((C_in, 2 * pad), dtype)
        for n in range(Nb):
            s = n * F + 2 * pad
            frame_ref[:, s:s + L] = x_ref[n]
            if gap_w > 0:
                frame_ref[:, s + L:s + L + gap_w] = jnp.zeros((C_in, gap_w), dtype)

        # ---- conv1 (+ folded BN + bias) + ReLU : ONE 2-D MXU matmul ----
        # h1 column c holds conv1 output t1 = (c mod F) - pad of sample (c // F);
        # tap k reads frame column c + k*dil.  The indicator row gates the bias so
        # invalid columns come out exactly 0 (raw taps there are all zeros too),
        # giving conv2 its zero padding for free — no select needed.
        taps1 = jnp.concatenate(
            [frame_ref[:, k * dil:k * dil + T1] for k in range(K)] + [ind1_ref[...]],
            axis=0)                                             # (K*C_in + 1, T1)
        raw1 = jnp.dot(w1_ref[...], taps1,
                       preferred_element_type=jnp.float32)      # (C_out, T1) f32
        h1 = jnp.maximum(raw1, 0.0).astype(dtype)               # bf16 for 2nd MXU pass

        # ---- conv2 (+ folded BN + bias) + ReLU ----
        # h2 column c holds conv2 output t2 = c mod F of sample c // F (valid t2 < L2);
        # junk columns are never read by the pooling below, so a plain all-ones bias
        # row suffices and no masking is required.
        taps2 = jnp.concatenate(
            [h1[:, k * dil:k * dil + T2] for k in range(K)] + [jnp.ones((1, T2), dtype)],
            axis=0)                                             # (K*C_out + 1, T2)
        raw2 = jnp.dot(w2_ref[...], taps2,
                       preferred_element_type=jnp.float32)      # (C_out, T2) f32
        h2 = jnp.maximum(raw2, 0.0)

        # ---- AdaptiveAvgPool1d(1): mean over the true L2 columns of each slab ----
        parts = [jnp.sum(h2[:, n * F:n * F + L2], axis=1, keepdims=True)
                 for n in range(Nb)]
        pooled = jnp.concatenate(parts, axis=1) * inv_L2        # (C_out, Nb) f32
        o_ref[0] = pooled

    return kernel


def tcn_block_forward(x, params, *, kernel_size=3, dilation=1,
                      block_batch=8, mxu_dtype=jnp.bfloat16):
    """x: (N, C_in, L) float32.  Returns (N, C_out, 1) float32."""
    N, C_in, L = x.shape
    (w1, b1, g1, be1, m1, v1, w2, b2, g2, be2, m2, v2) = params
    C_out = w1.shape[0]
    K, dil = kernel_size, dilation
    pad = (K - 1) * dil
    L1 = L + pad
    L2 = L1 + pad
    F = _round_up(L2, 128)            # per-sample slab width in the merged frame
    eps = 1e-5

    # ---- pick Nb: samples folded into the matmul lane dim per grid step ----
    Nb = max(1, min(block_batch, N))
    if N >= 2:
        Nb = min(Nb, (N + 1) // 2)    # >= 2 grid steps so v7x megacore has work
    while Nb > 1 and _step_vmem_bytes(Nb, C_in, C_out, K, L, F, pad) > _VMEM_BUDGET:
        Nb = (Nb + 1) // 2
    # TODO(synk): if even Nb == 1 exceeds the budget (very large C_out*L), add an
    # L-tiling grid axis with a (K-1)*dil halo instead of shrinking Nb further.
    G = -(-N // Nb)
    Npad = G * Nb

    T2 = Nb * F
    T1 = T2 + pad
    TF = T2 + 2 * pad

    # ---- fold eval-mode BN into the conv weights; append the combined shift as an
    #      extra contraction column (its tap row is the valid-column indicator) ----
    inv1 = g1 / jnp.sqrt(v1 + eps)
    t1 = be1 + (b1 - m1) * inv1
    w1m = jnp.transpose(w1 * inv1[:, None, None], (0, 2, 1)).reshape(C_out, K * C_in)
    w1a = jnp.concatenate([w1m, t1[:, None]], axis=1).astype(mxu_dtype)

    inv2 = g2 / jnp.sqrt(v2 + eps)
    t2 = be2 + (b2 - m2) * inv2
    w2m = jnp.transpose(w2 * inv2[:, None, None], (0, 2, 1)).reshape(C_out, K * C_out)
    w2a = jnp.concatenate([w2m, t2[:, None]], axis=1).astype(mxu_dtype)

    # conv1 valid-column indicator over the h1 frame: column c is a real conv1 output
    # iff (c mod F) in [pad, pad + L1).
    cm = jnp.arange(T1, dtype=jnp.int32) % F
    ind1 = ((cm >= pad) & (cm < pad + L1)).astype(mxu_dtype).reshape(1, T1)

    # Input stays in its original (N, C_in, L) layout — no HBM-side zero-padded frame,
    # just a bf16 cast (+ tiny batch pad to a multiple of Nb).
    xp = x.astype(mxu_dtype)
    if Npad != N:
        xp = jnp.concatenate([xp, jnp.zeros((Npad - N, C_in, L), mxu_dtype)], axis=0)

    kern = make_tcn_kernel(K, dil, C_in, C_out, L, F, Nb, mxu_dtype)

    est = _step_vmem_bytes(Nb, C_in, C_out, K, L, F, pad)
    vmem_limit = int(min(64 * 1024 * 1024, max(32 * 1024 * 1024, 2 * est)))

    out3 = pl.pallas_call(
        kern,
        out_shape=jax.ShapeDtypeStruct((G, C_out, Nb), jnp.float32),
        grid_spec=pltpu.PrefetchScalarGridSpec(
            num_scalar_prefetch=0,
            grid=(G,),
            in_specs=[
                pl.BlockSpec((Nb, C_in, L), lambda i: (i, 0, 0)),
                pl.BlockSpec(w1a.shape, lambda i: (0, 0)),
                pl.BlockSpec(ind1.shape, lambda i: (0, 0)),
                pl.BlockSpec(w2a.shape, lambda i: (0, 0)),
            ],
            out_specs=pl.BlockSpec((1, C_out, Nb), lambda i: (i, 0, 0)),
            scratch_shapes=[pltpu.VMEM((C_in, TF), mxu_dtype)],
        ),
        compiler_params=pltpu.CompilerParams(
            dimension_semantics=("parallel",),
            vmem_limit_bytes=vmem_limit),
    )(xp, w1a, ind1, w2a)

    # (G, C_out, Nb) -> (N, C_out, 1)
    out = jnp.transpose(out3, (0, 2, 1)).reshape(Npad, C_out)[:N]
    return out[:, :, None]


def ref_forward(x, params, *, kernel_size=3, dilation=1):
    """Pure-JAX f32 reference (mirrors PyTorch TCNBlock.forward in eval mode)."""
    (w1, b1, g1, be1, m1, v1, w2, b2, g2, be2, m2, v2) = params
    pad = (kernel_size - 1) * dilation
    eps = 1e-5

    def conv(h, w, b):
        y = jax.lax.conv_general_dilated(
            h, w, window_strides=(1,), padding=[(pad, pad)],
            rhs_dilation=(dilation,),
            dimension_numbers=("NCH", "OIH", "NCH"))
        return y + b[None, :, None]

    def bn(h, g, be, m, v):
        return (g[None, :, None] * (h - m[None, :, None])
                / jnp.sqrt(v[None, :, None] + eps) + be[None, :, None])

    h = jax.nn.relu(bn(conv(x, w1, b1), g1, be1, m1, v1))
    h = jax.nn.relu(bn(conv(h, w2, b2), g2, be2, m2, v2))
    return jnp.mean(h, axis=-1, keepdims=True)


if __name__ == "__main__":
    N, C_in, C_out, L, K, DIL = 2, 4, 8, 16, 3, 1

    key = jax.random.PRNGKey(0)
    ks = jax.random.split(key, 13)
    f32 = jnp.float32

    x = jax.random.normal(ks[0], (N, C_in, L), f32)

    w1 = 0.2 * jax.random.normal(ks[1], (C_out, C_in, K), f32)
    b1 = 0.1 * jax.random.normal(ks[2], (C_out,), f32)
    g1 = 1.0 + 0.1 * jax.random.normal(ks[3], (C_out,), f32)
    be1 = 0.1 * jax.random.normal(ks[4], (C_out,), f32)
    m1 = 0.1 * jax.random.normal(ks[5], (C_out,), f32)
    v1 = 1.0 + 0.1 * jnp.abs(jax.random.normal(ks[6], (C_out,), f32))

    w2 = 0.2 * jax.random.normal(ks[7], (C_out, C_out, K), f32)
    b2 = 0.1 * jax.random.normal(ks[8], (C_out,), f32)
    g2 = 1.0 + 0.1 * jax.random.normal(ks[9], (C_out,), f32)
    be2 = 0.1 * jax.random.normal(ks[10], (C_out,), f32)
    m2 = 0.1 * jax.random.normal(ks[11], (C_out,), f32)
    v2 = 1.0 + 0.1 * jnp.abs(jax.random.normal(ks[12], (C_out,), f32))

    params = (w1, b1, g1, be1, m1, v1, w2, b2, g2, be2, m2, v2)

    fwd = jax.jit(partial(tcn_block_forward, kernel_size=K, dilation=DIL))
    out = jax.block_until_ready(fwd(x, params))

    ref = jax.block_until_ready(ref_forward(x, params, kernel_size=K, dilation=DIL))

    assert out.shape == (N, C_out, 1), out.shape
    # bf16 MXU operands (f32 accumulate / f32 pooling) -> bf16-appropriate tolerance.
    assert jnp.allclose(out, ref, atol=2e-2, rtol=2e-2), (
        float(jnp.max(jnp.abs(out - ref))))
    print("KERNEL_OK")
</pallas_src>

<mosaic_0001>
module attributes {stable_mosaic.version = 11 : i64} {
  func.func @kernel(%arg0: i32, %arg1: memref<1x4x16xbf16, #tpu.memory_space<vmem>>, %arg2: memref<8x13xbf16, #tpu.memory_space<vmem>>, %arg3: memref<1x130xbf16, #tpu.memory_space<vmem>>, %arg4: memref<8x25xbf16, #tpu.memory_space<vmem>>, %arg5: memref<1x8x1xf32, #tpu.memory_space<vmem>>, %arg6: memref<4x132xbf16, #tpu.memory_space<vmem>>) attributes {dimension_semantics = [#tpu.dimension_semantics<parallel>], iteration_bounds = array<i64: 2>, scalar_prefetch = 0 : i64, scratch_operands = 1 : i64, tpu.core_type = #tpu.core_type<tc>, window_params = [{transform_indices = @transform_0, window_bounds = array<i64: 1, 4, 16>}, {pipeline_mode = #tpu.pipeline_mode<synchronous>, transform_indices = @transform_1, window_bounds = array<i64: 8, 13>}, {pipeline_mode = #tpu.pipeline_mode<synchronous>, transform_indices = @transform_2, window_bounds = array<i64: 1, 130>}, {pipeline_mode = #tpu.pipeline_mode<synchronous>, transform_indices = @transform_3, window_bounds = array<i64: 8, 25>}, {transform_indices = @transform_4, window_bounds = array<i64: 1, 8, 1>}]} {
    %cst = arith.constant 0.000000e+00 : bf16
    %0 = vector.broadcast %cst : bf16 to vector<4x4xbf16>
    %c0 = arith.constant 0 : index
    %c0_0 = arith.constant 0 : index
    %1 = vector.load %arg6[%c0, %c0_0] : memref<4x132xbf16, #tpu.memory_space<vmem>>, vector<4x4xbf16>
    tpu.vector_store %arg6[%c0, %c0_0], %0 {strides = array<i32>} : memref<4x132xbf16, #tpu.memory_space<vmem>>, vector<4x4xbf16>,
    %c0_1 = arith.constant 0 : index
    %c0_2 = arith.constant 0 : index
    %c0_3 = arith.constant 0 : index
    %2 = vector.load %arg1[%c0_1, %c0_2, %c0_3] : memref<1x4x16xbf16, #tpu.memory_space<vmem>>, vector<1x4x16xbf16>
    %3 = vector.shape_cast %2 : vector<1x4x16xbf16> to vector<4x16xbf16>
    %c0_4 = arith.constant 0 : index
    %c4 = arith.constant 4 : index
    %4 = vector.load %arg6[%c0_4, %c4] : memref<4x132xbf16, #tpu.memory_space<vmem>>, vector<4x16xbf16>
    tpu.vector_store %arg6[%c0_4, %c4], %3 {strides = array<i32>} : memref<4x132xbf16, #tpu.memory_space<vmem>>, vector<4x16xbf16>,
    %cst_5 = arith.constant 0.000000e+00 : bf16
    %5 = vector.broadcast %cst_5 : bf16 to vector<4x112xbf16>
    %c0_6 = arith.constant 0 : index
    %c20 = arith.constant 20 : index
    %6 = vector.load %arg6[%c0_6, %c20] : memref<4x132xbf16, #tpu.memory_space<vmem>>, vector<4x112xbf16>
    tpu.vector_store %arg6[%c0_6, %c20], %5 {strides = array<i32>} : memref<4x132xbf16, #tpu.memory_space<vmem>>, vector<4x112xbf16>,
    %c0_7 = arith.constant 0 : index
    %c0_8 = arith.constant 0 : index
    %7 = vector.load %arg6[%c0_7, %c0_8] : memref<4x132xbf16, #tpu.memory_space<vmem>>, vector<4x130xbf16>
    %c0_9 = arith.constant 0 : index
    %c1 = arith.constant 1 : index
    %8 = vector.load %arg6[%c0_9, %c1] : memref<4x132xbf16, #tpu.memory_space<vmem>>, vector<4x130xbf16>
    %c0_10 = arith.constant 0 : index
    %c2 = arith.constant 2 : index
    %9 = vector.load %arg6[%c0_10, %c2] : memref<4x132xbf16, #tpu.memory_space<vmem>>, vector<4x130xbf16>
    %c0_11 = arith.constant 0 : index
    %c0_12 = arith.constant 0 : index
    %10 = vector.load %arg3[%c0_11, %c0_12] : memref<1x130xbf16, #tpu.memory_space<vmem>>, vector<1x130xbf16>
    %11 = tpu.concatenate %7, %8, %9, %10 in 0 : vector<4x130xbf16>, vector<4x130xbf16>, vector<4x130xbf16>, vector<1x130xbf16> -> vector<13x130xbf16>
    %c0_13 = arith.constant 0 : index
    %c0_14 = arith.constant 0 : index
    %12 = vector.load %arg2[%c0_13, %c0_14] : memref<8x13xbf16, #tpu.memory_space<vmem>>, vector<8x13xbf16>
    %cst_15 = arith.constant dense<0.000000e+00> : vector<8x130xf32>
    %13 = tpu.matmul %12, %11, %cst_15 {dimension_numbers = #tpu.dot_dimension_numbers<[1], [0], [0], [1], [0, 0, 1, 1], [], []>} : vector<8x13xbf16>, vector<13x130xbf16>, vector<8x130xf32> -> vector<8x130xf32>
    %cst_16 = arith.constant 0.000000e+00 : f32
    %14 = vector.broadcast %cst_16 : f32 to vector<8x130xf32>
    %15 = arith.maximumf %13, %14 : vector<8x130xf32>
    %16 = arith.truncf %15 : vector<8x130xf32> to vector<8x130xbf16>
    %17 = vector.extract_strided_slice %16 {offsets = [0, 0], sizes = [8, 128], strides = [1, 1]} : vector<8x130xbf16> to vector<8x128xbf16>
    %18 = vector.extract_strided_slice %16 {offsets = [0, 1], sizes = [8, 128], strides = [1, 1]} : vector<8x130xbf16> to vector<8x128xbf16>
    %19 = vector.extract_strided_slice %16 {offsets = [0, 2], sizes = [8, 128], strides = [1, 1]} : vector<8x130xbf16> to vector<8x128xbf16>
    %cst_17 = arith.constant 1.000000e+00 : bf16
    %20 = vector.broadcast %cst_17 : bf16 to vector<1x128xbf16>
    %21 = tpu.concatenate %17, %18, %19, %20 in 0 : vector<8x128xbf16>, vector<8x128xbf16>, vector<8x128xbf16>, vector<1x128xbf16> -> vector<25x128xbf16>
    %c0_18 = arith.constant 0 : index
    %c0_19 = arith.constant 0 : index
    %22 = vector.load %arg4[%c0_18, %c0_19] : memref<8x25xbf16, #tpu.memory_space<vmem>>, vector<8x25xbf16>
    %cst_20 = arith.constant dense<0.000000e+00> : vector<8x128xf32>
    %23 = tpu.matmul %22, %21, %cst_20 {dimension_numbers = #tpu.dot_dimension_numbers<[1], [0], [0], [1], [0, 0, 1, 1], [], []>} : vector<8x25xbf16>, vector<25x128xbf16>, vector<8x128xf32> -> vector<8x128xf32>
    %cst_21 = arith.constant 0.000000e+00 : f32
    %24 = vector.broadcast %cst_21 : f32 to vector<8x128xf32>
    %25 = arith.maximumf %23, %24 : vector<8x128xf32>
    %26 = vector.extract_strided_slice %25 {offsets = [0, 0], sizes = [8, 20], strides = [1, 1]} : vector<8x128xf32> to vector<8x20xf32>
    %cst_22 = arith.constant dense<0.000000e+00> : vector<8xf32>
    %27 = vector.multi_reduction <add>, %26, %cst_22 [1] : vector<8x20xf32> to vector<8xf32>
    %28 = vector.shape_cast %27 : vector<8xf32> to vector<8x1xf32>
    %cst_23 = arith.constant 5.000000e-02 : f32
    %29 = vector.broadcast %cst_23 : f32 to vector<8x1xf32>
    %30 = arith.mulf %28, %29 : vector<8x1xf32>
    %c0_24 = arith.constant 0 : index
    %c0_25 = arith.constant 0 : index
    %c0_26 = arith.constant 0 : index
    %31 = vector.load %arg5[%c0_24, %c0_25, %c0_26] : memref<1x8x1xf32, #tpu.memory_space<vmem>>, vector<1x8x1xf32>
    %32 = vector.shape_cast %31 : vector<1x8x1xf32> to vector<8x1xf32>
    %33 = vector.shape_cast %30 : vector<8x1xf32> to vector<1x8x1xf32>
    tpu.vector_store %arg5[%c0_24, %c0_25, %c0_26], %33 {strides = array<i32>} : memref<1x8x1xf32, #tpu.memory_space<vmem>>, vector<1x8x1xf32>,
    return
  }
  func.func @transform_0(%arg0: i32) -> (i32, i32, i32) {
    %c0_i32 = arith.constant 0 : i32
    %c0_i32_0 = arith.constant 0 : i32
    %c0_i32_1 = arith.constant 0 : i32
    return %arg0, %c0_i32, %c0_i32_0 : i32, i32, i32
  }
  func.func @transform_1(%arg0: i32) -> (i32, i32) {
    %c0_i32 = arith.constant 0 : i32
    %c0_i32_0 = arith.constant 0 : i32
    %c0_i32_1 = arith.constant 0 : i32
    return %c0_i32, %c0_i32_0 : i32, i32
  }
  func.func @transform_2(%arg0: i32) -> (i32, i32) {
    %c0_i32 = arith.constant 0 : i32
    %c0_i32_0 = arith.constant 0 : i32
    %c0_i32_1 = arith.constant 0 : i32
    return %c0_i32, %c0_i32_0 : i32, i32
  }
  func.func @transform_3(%arg0: i32) -> (i32, i32) {
    %c0_i32 = arith.constant 0 : i32
    %c0_i32_0 = arith.constant 0 : i32
    %c0_i32_1 = arith.constant 0 : i32
    return %c0_i32, %c0_i32_0 : i32, i32
  }
  func.func @transform_4(%arg0: i32) -> (i32, i32, i32) {
    %c0_i32 = arith.constant 0 : i32
    %c0_i32_0 = arith.constant 0 : i32
    %c0_i32_1 = arith.constant 0 : i32
    return %arg0, %c0_i32, %c0_i32_0 : i32, i32, i32
  }
}

</mosaic_0001>

<bundles_post_ra>
// kernel: tcn_block_forward.1
= control target key start
LH: loop header
LB: loop body
LE: loop exit
PB: predicated region body
PF: predicated region fallthrough
CT: control target
= control target key end

     0   :  { %s555_s15 = smov 0   ;;  %s607_s0 = inlined_call_operand.vmem [shape: bf16[2,4,16], index: 0, kind: input, shape index: {}]   ;;  %s608_s1 = inlined_call_operand.vmem [shape: bf16[8,13], index: 1, kind: input, shape index: {}]   ;;  %s609_s2 = inlined_call_operand.vmem [shape: bf16[1,130], index: 2, kind: input, shape index: {}]   ;;  %s610_s3 = inlined_call_operand.vmem [shape: bf16[8,25], index: 3, kind: input, shape index: {}]   ;;  %s611_s4 = inlined_call_operand.vmem [shape: f32[2,8,1], index: 4, kind: output, shape index: {}]  }
   0x1 LB: > { %s472_s16 = sadd.s32 4294967295, %s519_s15   ;;  %p476_p0 = scmp.ge.s32.totalorder %s519_s15, 1  ;;  %s519_s15 = sphi %s555_s15, %s14_s15  }
   0x2   : > { %p161_p1 = scmp.lt.s32.totalorder %s519_s15, 3 }
   0x4   : > { %p162_p2 = pnand %p476_p0, %p161_p1 }
   0x5   : > { %p185_p3 = scmp.lt.s32.totalorder (!%p162_p2), %s472_s16, 1  ;;  %vm195_vm0 = vcmask (!%p162_p2), 25600   ;;  %v521_v0 = vmov (!%p162_p2), 0   ;;  %s522_s21 = smov (!%p162_p2), 4   ;;  %vm204_vm1 = vcmask (!%p162_p2), 1041568   ;;  %vm205_vm2 = vcmask (!%p162_p2), 27650  }
   0x6   : > { %165 = sbr.rel (%p162_p2) target bundleno = 979 (0x3d3), region = 36  ;;  %196 = vst.msk [vmem:[#allocation2] sm:$0x3] (!%p162_p2), %vm195_vm0, %v521_v0  ;;  %327 = vmatprep.mubr.bf16.mxu0 (!%p162_p2), %v521_v0  ;;  %vm202_vm3 = vcmask (!%p162_p2), 156704   ;;  %vm206_vm4 = vmor (!%p162_p2), %vm205_vm2, %vm204_vm1  ;;  %v523_v3 = vmov (!%p162_p2), 1983009808   ;;  %v214_v5 = vlaneseq (!%p162_p2) }
   0x7   : > { %v212_v4 = vunpack.c.l.s4 (!%p162_p2), %v523_v3  ;;  %s524_s22 = smov (!%p162_p2), 127   ;;  %s525_s23 = smov (!%p162_p2), 126   ;;  %v526_v15 = vmov (!%p162_p2), 1966171168   ;;  %vm278_vm5 = vcmask (!%p162_p2), 1045504   ;;  %vm266_vm6 = vcmask (!%p162_p2), 1041408  }
   0x8   : > { %v215_v7 = vshrl.u32 (!%p162_p2), %v214_v5, 7  ;;  %v251_v16 = vunpack.c.l.s4 (!%p162_p2), %v526_v15  ;;  %v479_v18 = vld.sshfl [vmem:[%s609_s2] sm:$0x11 pattern:$0x75316420] (!%p162_p2)  ;;  %vm232_vm7 = vcmask (!%p162_p2), 1039360  }
   0x9   : > { %v213_v6 = vunpack.c.0.s8 (!%p162_p2), %v212_v4  ;;  %v249_v20 = vcombine.low (!%p162_p2), %v479_v18, %v479_v18  ;;  %vm288_vm8 = vcmask (!%p162_p2), 1046528   ;;  %v527_v24 = vmov (!%p162_p2), 65535   ;;  %v283_v43 = vld [vmem:[%s608_s1] sm:$0xf] (!%p162_p2) }
   0xa   : > { %v252_v17 = vunpack.c.0.s8 (!%p162_p2), %v251_v16  ;;  %v289_v25 = vsel (!%p162_p2), %vm278_vm5, 4294967295, %v527_v24  ;;  %vm273_vm9 = vcmask (!%p162_p2), 1043456   ;;  %vm239_vm10 = vcmask (!%p162_p2), 1031168  }
   0xb   : > { %v216_v8 = vsub.s32 (!%p162_p2), %v213_v6, %v215_v7  ;;  %v290_v32 = vsel (!%p162_p2), %vm288_vm8, %v289_v25, 0  ;;  %vm284_vm11 = vcmask (!%p162_p2), 105472   ;;  %v528_v44 = vmov (!%p162_p2), 0.0  }
   0xc   : > { %v255_v19 = vsub.s32 (!%p162_p2), %v252_v17, %v215_v7  ;;  %487 = vmatprep.subr.bf16.mxu1 (!%p162_p2), %v528_v44  ;;  %vm529_vm12 = vmmov (!%p162_p2), 0   ;;  %v367_v57 = vsel (!%p162_p2), %vm273_vm9, 4294967295, %v527_v24  ;;  %vm366_vm13 = vcmask (!%p162_p2), 1044480  }
   0xd   : > { %s613_s16 = smov (!%p185_p3, %s472_s16), 1  ;;  %491 = vmatprep.mubr.msk.bf16.mxu1 %vm529_vm12, %v528_v44  ;;  %v368_v61 = vsel %vm366_vm13, %v367_v57, 0  ;;  %vm362_vm14 = vcmask 203776   ;;  %vm412_vm15 = vcmask 162816   ;;  %vm417_vm0 = vcmask 7168  }
   0xe   : > { %s477_s17 = sshll.u32 %s613_s16, 1  ;;  %v263_v21 = vrot.slane %v479_v18, %v255_v19  ;;  %v256_v26 = vrot.slane %v249_v20, %v255_v19  ;;  %s478_s30 = sshll.u32 %s613_s16, 3 }
   0xf   : > { %s188_s20 = scalar_lea.vmem %s607_s0, %s477_s17  ;;  %s192_s7 = scalar_lea.vmem %s611_s4, %s478_s30 }
  0x10   : > { %v197_v1 = vld [vmem:[%s188_s20] sm:$0x3]  ;;  %v265_v28 = vcombine.low %v263_v21, %v263_v21  ;;  %v264_v34 = vcombine.low %v256_v26, %v256_v26 }
  0x11   : > { %199 = vrot.lane.b32.xlu0 %v197_v1, %s522_s21 }
  0x83   : > { %v200_v2 = vpop.permute.xlu0 %199 }
  0x84   : > { %203 = vst.msk [vmem:[#allocation2] sm:$0x3] %vm202_vm3, %v200_v2  ;;  %v361_v2 = vld [vmem:[%s610_s3] sm:$0xf] }
  0x85   : > { %207 = vst.msk [vmem:[#allocation2] sm:$0xf] %vm206_vm4, %v521_v0 }
  0x8c   : > { %v208_v9 = vld [vmem:[#allocation2] sm:$0xf] }
  0x8d   : > { %v219_v10 = vcombine.low %v208_v9, %v208_v9  ;;  %v217_v12 = vrot.slane %v208_v9, %v216_v8 }
  0x8f   : > { %v226_v11 = vrot.slane %v219_v10, %v216_v8  ;;  %v234_v14 = vcombine.low %v217_v12, %v217_v12  ;;  %v218_v22 = vcombine.high %v217_v12, %v217_v12 }
  0x91   : > { %228 = vrot.lane.b32.xlu0 %v226_v11, %s524_s22  ;;  %v227_v13 = vcombine.high %v226_v11, %v226_v11 }
  0x93   : > { %230 = vrot.lane.b32.xlu1 %v227_v13, %s524_s22 }
  0x95   : > { %237 = vrot.lane.b32.xlu0 %v217_v12, %s525_s23 }
  0x97   : > { %235 = vrot.lane.b32.xlu1 %v234_v14, %s525_s23 }
 0x103   : > { %v229_v23 = vpop.permute.xlu0 %228 }
 0x105   : > { %v231_v27 = vpop.permute.xlu1 %230 }
 0x106   : > { %v272_v29 = vsel %vm266_vm6, %v218_v22, %v231_v27  ;;  %v233_v30 = vsel %vm232_vm7, %v229_v23, %v231_v27 }
 0x107   : > { %v238_v31 = vpop.permute.xlu0 %237  ;;  %v269_v37 = vsel %vm266_vm6, %v217_v12, %v233_v30 }
 0x108   : > { %v277_v33 = vsel %vm273_vm9, %v272_v29, %v238_v31 }
 0x109   : > { %v236_v35 = vpop.permute.xlu1 %235  ;;  %v282_v36 = vsel %vm278_vm5, %v277_v33, %v265_v28 }
 0x10a   : > { %v240_v38 = vsel %vm239_vm10, %v236_v35, %v238_v31  ;;  %v293_v39 = vand.u32 %v290_v32, %v282_v36 }
 0x10b   : > { %v275_v40 = vsel %vm273_vm9, %v269_v37, %v240_v38 }
 0x10c   : > { %295 = vmatprep.subr.bf16.mxu0 %v293_v39  ;;  %v280_v41 = vsel %vm278_vm5, %v275_v40, %v264_v34 }
 0x10d   : > { %v291_v42 = vand.u32 %v290_v32, %v280_v41 }
 0x10f   : > { %296 = vmatpush1.bf16.msra.mxu0 %v291_v42 }
 0x112   : > { %480 = vmatmul.mubr.msk.bf16.vlgmr.msra.gmra.mrb[0].mxu0 %vm284_vm11, %v283_v43 }
 0x1e5   : > { %v329_v45 = vpop.f32.mrb[0].mxu0 }
 0x1e6   : > { %v336_v46 = vmax.f32 %v329_v45, 0.0  ;;  %v331_v47 = vpop.f32.mrb[1].mxu0 }
 0x1e7   : > { %v337_v48 = vmax.f32 %v331_v47, 0.0  ;;  %v333_v49 = vpop.f32.mrb[2].mxu0 }
 0x1e8   : > { %v338_v50 = vpack.c.bf16 %v336_v46, %v336_v46  ;;  %v334_v51 = vpop.f32.mrb[3].mxu0 }
 0x1e9   : > { %v339_v52 = vpack.c.bf16 %v337_v48, %v337_v48 }
 0x1ea   : > { %v342_v53 = vrot.slane %v338_v50, 4 }
 0x1eb   : > { %v343_v54 = vrot.slane %v339_v52, 4 }
 0x1ec   : > { %344 = vrot.lane.b32.xlu1 %v342_v53, %s524_s22 }
 0x1ed   : > { %346 = vrot.lane.b32.xlu0 %v343_v54, %s524_s22 }
 0x1f0   : > { %349 = vrot.lane.b32.xlu1 %v338_v50, %s525_s23 }
 0x1f1   : > { %351 = vrot.lane.b32.xlu0 %v339_v52, %s525_s23 }
 0x25e   : > { %v345_v55 = vpop.permute.xlu1 %344 }
 0x25f   : > { %v347_v56 = vpop.permute.xlu0 %346 }
 0x260   : > { %v348_v58 = vsel %vm232_vm7, %v345_v55, %v347_v56 }
 0x261   : > { %v356_v59 = vsel %vm273_vm9, %v338_v50, %v348_v58 }
 0x262   : > { %v350_v60 = vpop.permute.xlu1 %349  ;;  %488 = vmatpush3.bf16.msra.mxu1 %v356_v59 }
 0x263   : > { %v352_v62 = vpop.permute.xlu0 %351  ;;  %489 = vmatprep.subr.bf16.mxu1 %v528_v44 }
 0x264   : > { %v353_v63 = vsel %vm239_vm10, %v350_v60, %v352_v62 }
 0x265   : > { %v360_v0 = vsel %vm273_vm9, %v353_v63, 1065369472 }
 0x266   : > { %v369_v1 = vand.u32 %v368_v61, %v360_v0 }
 0x268   : > { %490 = vmatpush3.bf16.msra.mxu1 %v369_v1 }
 0x26b   : > { %492 = vmatmul.mubr.msk.bf16.vlgmr.msra.gmra.mrb[0].mxu1 %vm362_vm14, %v361_v2 }
 0x33e   : > { %v405_v3 = vpop.f32.mrb[0].mxu1 }
 0x33f   : > { %v411_v4 = vmax.f32 %v405_v3, 0.0  ;;  %v493_v5 = vpop.f32.mrb[1].mxu1 }
 0x340   : > { %v408_v6 = vpop.f32.mrb[2].mxu1 }
 0x341   : > { %v494_v7 = vpop.f32.mrb[3].mxu1  ;;  %v413_v8 = vsel %vm412_vm15, %v411_v4, 0.0 }
 0x342   : > { %414 = vadd.xlane.f32.xlu1 %v413_v8 }
 0x3cf   : > { %v415_v9 = vpop.xlane.xlu1 %414 }
 0x3d0   : > { %v416_v10 = vmul.f32 0.05, %v415_v9 }
 0x3d2   : > { %418 = vst.msk [vmem:[%s192_s7] sm:$0xff] %vm417_vm0, %v416_v10 }
 0x3d3 PF: > { %s14_s15 = sadd.s32 1, %s519_s15  }
 0x3d4   : > { %p11_p4 = scmp.ge.s32.totalorder %s14_s15, 4  }
 0x3d6   :  { %13 = sbr.rel (!%p11_p4) target bundleno = 1 (0x1), region = 66 }

</bundles_post_ra>
